<compile_context>
chip_gen: v7x
topology: tpu7x:2x2x1
jax: 0.10.0
libtpu: 0.0.40
codegen_flags: <defaults>
</compile_context>

<pallas_src>
import jax
import jax.numpy as jnp
from jax.experimental import pallas as pl
from jax.experimental.pallas import tpu as pltpu


def _char_decoder_kernel(ids_ref, hc0_ref, table_ref, whh_ref, wout_ref, bout_ref,
                         scores_ref, state_ref, h_all_sc):
    """Whole-sequence LSTM recurrence + batched vocab projection in one invocation.

    ids_ref:    (L*Bp, 1)  int32 token ids (batch-padded, time-major rows)
    hc0_ref:    (2, Bp, H) initial (h0, c0)
    table_ref:  (Vt, 4H)   folded emb@W_ih^T + b, gate-permuted to (i, f, o, g), row-padded
    whh_ref:    (H, 4H)    recurrent weights (transposed, gate-permuted)
    wout_ref:   (H, Vp)    output projection (transposed, lane-padded)
    bout_ref:   (1, Vp)
    scores_ref: (L*Bp, Vp) lane-dense output slab
    state_ref:  (2, Bp, H) final (h_n, c_n)
    h_all_sc:   (L*Bp, H)  VMEM scratch holding every h_t
    """
    LB = ids_ref.shape[0]
    Vt = table_ref.shape[0]
    _, Bp, H = hc0_ref.shape
    L = LB // Bp
    H3 = 3 * H

    # In-kernel embedding + input-projection gather as ONE one-hot MXU matmul over all
    # L*Bp tokens. Replaces the L*B*4H f32 xz HBM stream with ids + the tiny table, and
    # keeps the gather entirely off the serial per-step recurrence chain.
    ids = ids_ref[...]                                              # (L*Bp, 1) int32
    col = jax.lax.broadcasted_iota(jnp.int32, (LB, Vt), 1)
    onehot = (col == ids).astype(jnp.float32)                       # (L*Bp, Vt)
    xz_all = jnp.dot(onehot, table_ref[...],
                     preferred_element_type=jnp.float32)            # (L*Bp, 4H)

    h = hc0_ref[0]            # (Bp, H)  loop-carried in vregs
    c = hc0_ref[1]            # (Bp, H)
    whh = whh_ref[...]        # hoisted: loaded once

    # L is a small static trip count; a fully static loop keeps every slice static
    # (switch to lax.fori_loop(..., unroll=2..4) if L grows beyond ~16-32).
    for t in range(L):
        z = xz_all[t * Bp:(t + 1) * Bp, :] + jnp.dot(
            h, whh, preferred_element_type=jnp.float32)             # (Bp, 4H)
        # Gate order is (i, f, o, g): one contiguous sigmoid + one tanh per step.
        sig = jax.nn.sigmoid(z[:, 0:H3])
        g = jnp.tanh(z[:, H3:])
        i = sig[:, 0:H]
        f = sig[:, H:2 * H]
        o = sig[:, 2 * H:H3]
        c = f * c + i * g
        h = o * jnp.tanh(c)
        h_all_sc[t * Bp:(t + 1) * Bp, :] = h       # static, 8-row-aligned store

    # Final LSTM state, written exactly once into a single merged block.
    state_ref[0] = h
    state_ref[1] = c

    # Batched vocab projection over all L*Bp rows at once (lane-dense slab).
    scores_ref[...] = (jnp.dot(h_all_sc[...], wout_ref[...],
                               preferred_element_type=jnp.float32)
                       + bout_ref[...])


@jax.jit
def char_decoder_forward(input_ids, h0, c0, params):
    """Equivalent of CharDecoder.forward.

    input_ids: (L, B) int32
    h0, c0:    (1, B, H) float32
    returns (scores (L, B, V) float32, (h_n, c_n) each (1, B, H))
    """
    emb = params["emb"]          # (V, E), padding row zeroed
    w_ih_t = params["w_ih_t"]    # (E, 4H)
    w_hh_t = params["w_hh_t"]    # (H, 4H)
    b = params["b"]              # (1, 4H)  (b_ih + b_hh)
    w_out_t = params["w_out_t"]  # (H, V)
    b_out = params["b_out"]      # (1, V)

    L, B = input_ids.shape
    V, _ = emb.shape
    H = h0.shape[-1]

    Bp = 8 * pl.cdiv(B, 8)       # sublane-pad batch (use 16 if matmul operands go bf16)
    Vt = 8 * pl.cdiv(V, 8)       # sublane-pad gather-table rows
    Vp = 128 * pl.cdiv(V, 128)   # lane-dense padded vocab width

    # Gate permutation (i, f, g, o) -> (i, f, o, g): applied once to the table and
    # W_hh columns so the kernel does one contiguous sigmoid slice.
    perm = jnp.concatenate([jnp.arange(0, 2 * H),
                            jnp.arange(3 * H, 4 * H),
                            jnp.arange(2 * H, 3 * H)])

    # Fold embedding + input projection + bias into a single gather table (V, 4H):
    # (emb @ W)[ids] == emb[ids] @ W, exact, done once, not per step.
    table = (emb @ w_ih_t + b)[:, perm]                    # (V, 4H), gate-permuted
    table_p = jnp.pad(table, ((0, Vt - V), (0, 0)))        # (Vt, 4H)
    whh_p = w_hh_t[:, perm]                                # (H, 4H), gate-permuted

    # Lane-pad the vocab projection so the kernel writes an unmasked slab.
    w_out_p = jnp.pad(w_out_t, ((0, 0), (0, Vp - V)))
    b_out_p = jnp.pad(b_out, ((0, 0), (0, Vp - V)))

    # Batch-pad ids and initial state; padded rows are zero and sliced off afterwards.
    ids_p = jnp.pad(input_ids, ((0, 0), (0, Bp - B))).reshape(L * Bp, 1)
    hc0 = jnp.concatenate([h0, c0], axis=0)                # (2, B, H)
    hc0_p = jnp.pad(hc0, ((0, 0), (0, Bp - B), (0, 0)))    # (2, Bp, H)

    scores2d, state = pl.pallas_call(
        _char_decoder_kernel,
        out_shape=(
            jax.ShapeDtypeStruct((L * Bp, Vp), jnp.float32),
            jax.ShapeDtypeStruct((2, Bp, H), jnp.float32),
        ),
        grid=(1,),
        in_specs=[
            pl.BlockSpec((L * Bp, 1), lambda i: (0, 0)),        # ids
            pl.BlockSpec((2, Bp, H), lambda i: (0, 0, 0)),      # (h0, c0)
            pl.BlockSpec((Vt, 4 * H), lambda i: (0, 0)),        # folded gather table
            pl.BlockSpec((H, 4 * H), lambda i: (0, 0)),         # W_hh^T
            pl.BlockSpec((H, Vp), lambda i: (0, 0)),            # W_out^T (padded)
            pl.BlockSpec((1, Vp), lambda i: (0, 0)),            # b_out (padded)
        ],
        out_specs=[
            pl.BlockSpec((L * Bp, Vp), lambda i: (0, 0)),       # scores slab
            pl.BlockSpec((2, Bp, H), lambda i: (0, 0, 0)),      # (h_n, c_n)
        ],
        scratch_shapes=[
            pltpu.VMEM((L * Bp, H), jnp.float32),               # all h_t
        ],
        compiler_params=pltpu.CompilerParams(
            dimension_semantics=("arbitrary",)),                # single sequential program
    )(ids_p, hc0_p, table_p, whh_p, w_out_p, b_out_p)

    scores = scores2d.reshape(L, Bp, Vp)[:, :B, :V]
    h_n = state[0:1, :B, :]
    c_n = state[1:2, :B, :]
    return scores, (h_n, c_n)


def _reference_forward(input_ids, h0, c0, params):
    """Pure-JAX reference (mirrors torch.nn.LSTM + Linear) for validation."""
    emb = params["emb"]
    x_embed = emb[input_ids]                       # (L, B, E)
    w_ih_t, w_hh_t, b = params["w_ih_t"], params["w_hh_t"], params["b"]
    w_out_t, b_out = params["w_out_t"], params["b_out"]
    H = h0.shape[-1]

    def step(carry, x_t):
        h, c = carry
        z = x_t @ w_ih_t + h @ w_hh_t + b          # PyTorch gate order (i, f, g, o)
        i = jax.nn.sigmoid(z[:, 0:H])
        f = jax.nn.sigmoid(z[:, H:2 * H])
        g = jnp.tanh(z[:, 2 * H:3 * H])
        o = jax.nn.sigmoid(z[:, 3 * H:4 * H])
        c_new = f * c + i * g
        h_new = o * jnp.tanh(c_new)
        return (h_new, c_new), h_new

    (h_n, c_n), hs = jax.lax.scan(step, (h0[0], c0[0]), x_embed)
    scores = hs @ w_out_t + b_out
    return scores, (h_n[None], c_n[None])


if __name__ == "__main__":
    # Small, deterministic config consistent with CharDecoder.__init__:
    #   hidden_size=32, char_embedding_size=50, len(char2id)=30, char_pad=0.
    L, B, E, H, V = 8, 4, 50, 32, 30

    key = jax.random.PRNGKey(0)
    keys = jax.random.split(key, 8)

    emb = jax.random.normal(keys[0], (V, E), jnp.float32) * 0.1
    emb = emb.at[0].set(0.0)  # padding_idx = char_pad = 0

    params = {
        "emb": emb,
        "w_ih_t": jax.random.normal(keys[1], (E, 4 * H), jnp.float32) * 0.1,
        "w_hh_t": jax.random.normal(keys[2], (H, 4 * H), jnp.float32) * 0.1,
        "b": jax.random.normal(keys[3], (1, 4 * H), jnp.float32) * 0.1,
        "w_out_t": jax.random.normal(keys[4], (H, V), jnp.float32) * 0.1,
        "b_out": jax.random.normal(keys[5], (1, V), jnp.float32) * 0.1,
    }

    input_ids = jax.random.randint(keys[6], (L, B), 0, V, jnp.int32)
    h0 = jax.random.normal(keys[7], (1, B, H), jnp.float32) * 0.1
    c0 = jnp.zeros((1, B, H), jnp.float32)

    scores, (h_n, c_n) = char_decoder_forward(input_ids, h0, c0, params)
    jax.block_until_ready((scores, h_n, c_n))

    ref_scores, (ref_h, ref_c) = _reference_forward(input_ids, h0, c0, params)
    assert jnp.allclose(scores, ref_scores, atol=1e-4), "scores mismatch"
    assert jnp.allclose(h_n, ref_h, atol=1e-4), "h_n mismatch"
    assert jnp.allclose(c_n, ref_c, atol=1e-4), "c_n mismatch"

    # TODO(synk): train_forward's masked sum-cross-entropy and decode_greedy's
    # string assembly (python-side vocab lookup) are host/glue logic, not kernels.
    print("KERNEL_OK")
</pallas_src>

<mosaic_0001>
module attributes {stable_mosaic.version = 11 : i64} {
  func.func @_char_decoder_kernel(%arg0: i32, %arg1: memref<64x1xi32, #tpu.memory_space<vmem>>, %arg2: memref<2x8x32xf32, #tpu.memory_space<vmem>>, %arg3: memref<32x128xf32, #tpu.memory_space<vmem>>, %arg4: memref<32x128xf32, #tpu.memory_space<vmem>>, %arg5: memref<32x128xf32, #tpu.memory_space<vmem>>, %arg6: memref<1x128xf32, #tpu.memory_space<vmem>>, %arg7: memref<64x128xf32, #tpu.memory_space<vmem>>, %arg8: memref<2x8x32xf32, #tpu.memory_space<vmem>>, %arg9: memref<64x32xf32, #tpu.memory_space<vmem>>) attributes {dimension_semantics = [#tpu.dimension_semantics<arbitrary>], iteration_bounds = array<i64: 1>, scalar_prefetch = 0 : i64, scratch_operands = 1 : i64, tpu.core_type = #tpu.core_type<tc>, window_params = [{pipeline_mode = #tpu.pipeline_mode<synchronous>, transform_indices = @transform_0, window_bounds = array<i64: 64, 1>}, {pipeline_mode = #tpu.pipeline_mode<synchronous>, transform_indices = @transform_1, window_bounds = array<i64: 2, 8, 32>}, {pipeline_mode = #tpu.pipeline_mode<synchronous>, transform_indices = @transform_2, window_bounds = array<i64: 32, 128>}, {pipeline_mode = #tpu.pipeline_mode<synchronous>, transform_indices = @transform_3, window_bounds = array<i64: 32, 128>}, {pipeline_mode = #tpu.pipeline_mode<synchronous>, transform_indices = @transform_4, window_bounds = array<i64: 32, 128>}, {pipeline_mode = #tpu.pipeline_mode<synchronous>, transform_indices = @transform_5, window_bounds = array<i64: 1, 128>}, {pipeline_mode = #tpu.pipeline_mode<synchronous>, transform_indices = @transform_6, window_bounds = array<i64: 64, 128>}, {pipeline_mode = #tpu.pipeline_mode<synchronous>, transform_indices = @transform_7, window_bounds = array<i64: 2, 8, 32>}]} {
    %c0 = arith.constant 0 : index
    %c0_0 = arith.constant 0 : index
    %0 = vector.load %arg1[%c0, %c0_0] : memref<64x1xi32, #tpu.memory_space<vmem>>, vector<64x1xi32>
    %1 = tpu.iota {dimensions = array<i32: 1>} : vector<64x32xi32>
    %2 = vector.broadcast %0 : vector<64x1xi32> to vector<64x32xi32>
    %3 = arith.cmpi eq, %1, %2 : vector<64x32xi32>
    %4 = arith.extui %3 : vector<64x32xi1> to vector<64x32xi32>
    %5 = arith.sitofp %4 : vector<64x32xi32> to vector<64x32xf32>
    %c0_1 = arith.constant 0 : index
    %c0_2 = arith.constant 0 : index
    %6 = vector.load %arg3[%c0_1, %c0_2] : memref<32x128xf32, #tpu.memory_space<vmem>>, vector<32x128xf32>
    %cst = arith.constant dense<0.000000e+00> : vector<64x128xf32>
    %7 = tpu.matmul %5, %6, %cst {dimension_numbers = #tpu.dot_dimension_numbers<[1], [0], [0], [1], [0, 0, 1, 1], [], []>} : vector<64x32xf32>, vector<32x128xf32>, vector<64x128xf32> -> vector<64x128xf32>
    %c0_3 = arith.constant 0 : index
    %c0_4 = arith.constant 0 : index
    %c0_5 = arith.constant 0 : index
    %8 = vector.load %arg2[%c0_3, %c0_4, %c0_5] : memref<2x8x32xf32, #tpu.memory_space<vmem>>, vector<1x8x32xf32>
    %9 = vector.shape_cast %8 : vector<1x8x32xf32> to vector<8x32xf32>
    %c1 = arith.constant 1 : index
    %c0_6 = arith.constant 0 : index
    %c0_7 = arith.constant 0 : index
    %10 = vector.load %arg2[%c1, %c0_6, %c0_7] : memref<2x8x32xf32, #tpu.memory_space<vmem>>, vector<1x8x32xf32>
    %11 = vector.shape_cast %10 : vector<1x8x32xf32> to vector<8x32xf32>
    %c0_8 = arith.constant 0 : index
    %c0_9 = arith.constant 0 : index
    %12 = vector.load %arg4[%c0_8, %c0_9] : memref<32x128xf32, #tpu.memory_space<vmem>>, vector<32x128xf32>
    %13 = vector.extract_strided_slice %7 {offsets = [0, 0], sizes = [8, 128], strides = [1, 1]} : vector<64x128xf32> to vector<8x128xf32>
    %cst_10 = arith.constant dense<0.000000e+00> : vector<8x128xf32>
    %14 = tpu.matmul %9, %12, %cst_10 {dimension_numbers = #tpu.dot_dimension_numbers<[1], [0], [0], [1], [0, 0, 1, 1], [], []>} : vector<8x32xf32>, vector<32x128xf32>, vector<8x128xf32> -> vector<8x128xf32>
    %15 = arith.addf %13, %14 : vector<8x128xf32>
    %16 = vector.extract_strided_slice %15 {offsets = [0, 0], sizes = [8, 96], strides = [1, 1]} : vector<8x128xf32> to vector<8x96xf32>
    %17 = arith.negf %16 : vector<8x96xf32>
    %18 = math.exp %17 : vector<8x96xf32>
    %cst_11 = arith.constant 1.000000e+00 : f32
    %19 = vector.broadcast %cst_11 : f32 to vector<8x96xf32>
    %20 = arith.addf %19, %18 : vector<8x96xf32>
    %21 = arith.divf %19, %20 : vector<8x96xf32>
    %22 = vector.extract_strided_slice %15 {offsets = [0, 96], sizes = [8, 32], strides = [1, 1]} : vector<8x128xf32> to vector<8x32xf32>
    %23 = math.tanh %22 : vector<8x32xf32>
    %24 = vector.extract_strided_slice %21 {offsets = [0, 0], sizes = [8, 32], strides = [1, 1]} : vector<8x96xf32> to vector<8x32xf32>
    %25 = vector.extract_strided_slice %21 {offsets = [0, 32], sizes = [8, 32], strides = [1, 1]} : vector<8x96xf32> to vector<8x32xf32>
    %26 = vector.extract_strided_slice %21 {offsets = [0, 64], sizes = [8, 32], strides = [1, 1]} : vector<8x96xf32> to vector<8x32xf32>
    %27 = arith.mulf %25, %11 : vector<8x32xf32>
    %28 = arith.mulf %24, %23 : vector<8x32xf32>
    %29 = arith.addf %27, %28 : vector<8x32xf32>
    %30 = math.tanh %29 : vector<8x32xf32>
    %31 = arith.mulf %26, %30 : vector<8x32xf32>
    %c0_12 = arith.constant 0 : index
    %c0_13 = arith.constant 0 : index
    %32 = vector.load %arg9[%c0_12, %c0_13] : memref<64x32xf32, #tpu.memory_space<vmem>>, vector<8x32xf32>
    tpu.vector_store %arg9[%c0_12, %c0_13], %31 {strides = array<i32>} : memref<64x32xf32, #tpu.memory_space<vmem>>, vector<8x32xf32>,
    %33 = vector.extract_strided_slice %7 {offsets = [8, 0], sizes = [8, 128], strides = [1, 1]} : vector<64x128xf32> to vector<8x128xf32>
    %cst_14 = arith.constant dense<0.000000e+00> : vector<8x128xf32>
    %34 = tpu.matmul %31, %12, %cst_14 {dimension_numbers = #tpu.dot_dimension_numbers<[1], [0], [0], [1], [0, 0, 1, 1], [], []>} : vector<8x32xf32>, vector<32x128xf32>, vector<8x128xf32> -> vector<8x128xf32>
    %35 = arith.addf %33, %34 : vector<8x128xf32>
    %36 = vector.extract_strided_slice %35 {offsets = [0, 0], sizes = [8, 96], strides = [1, 1]} : vector<8x128xf32> to vector<8x96xf32>
    %37 = arith.negf %36 : vector<8x96xf32>
    %38 = math.exp %37 : vector<8x96xf32>
    %cst_15 = arith.constant 1.000000e+00 : f32
    %39 = vector.broadcast %cst_15 : f32 to vector<8x96xf32>
    %40 = arith.addf %39, %38 : vector<8x96xf32>
    %41 = arith.divf %39, %40 : vector<8x96xf32>
    %42 = vector.extract_strided_slice %35 {offsets = [0, 96], sizes = [8, 32], strides = [1, 1]} : vector<8x128xf32> to vector<8x32xf32>
    %43 = math.tanh %42 : vector<8x32xf32>
    %44 = vector.extract_strided_slice %41 {offsets = [0, 0], sizes = [8, 32], strides = [1, 1]} : vector<8x96xf32> to vector<8x32xf32>
    %45 = vector.extract_strided_slice %41 {offsets = [0, 32], sizes = [8, 32], strides = [1, 1]} : vector<8x96xf32> to vector<8x32xf32>
    %46 = vector.extract_strided_slice %41 {offsets = [0, 64], sizes = [8, 32], strides = [1, 1]} : vector<8x96xf32> to vector<8x32xf32>
    %47 = arith.mulf %45, %29 : vector<8x32xf32>
    %48 = arith.mulf %44, %43 : vector<8x32xf32>
    %49 = arith.addf %47, %48 : vector<8x32xf32>
    %50 = math.tanh %49 : vector<8x32xf32>
    %51 = arith.mulf %46, %50 : vector<8x32xf32>
    %c8 = arith.constant 8 : index
    %c0_16 = arith.constant 0 : index
    %52 = vector.load %arg9[%c8, %c0_16] : memref<64x32xf32, #tpu.memory_space<vmem>>, vector<8x32xf32>
    tpu.vector_store %arg9[%c8, %c0_16], %51 {strides = array<i32>} : memref<64x32xf32, #tpu.memory_space<vmem>>, vector<8x32xf32>,
    %53 = vector.extract_strided_slice %7 {offsets = [16, 0], sizes = [8, 128], strides = [1, 1]} : vector<64x128xf32> to vector<8x128xf32>
    %cst_17 = arith.constant dense<0.000000e+00> : vector<8x128xf32>
    %54 = tpu.matmul %51, %12, %cst_17 {dimension_numbers = #tpu.dot_dimension_numbers<[1], [0], [0], [1], [0, 0, 1, 1], [], []>} : vector<8x32xf32>, vector<32x128xf32>, vector<8x128xf32> -> vector<8x128xf32>
    %55 = arith.addf %53, %54 : vector<8x128xf32>
    %56 = vector.extract_strided_slice %55 {offsets = [0, 0], sizes = [8, 96], strides = [1, 1]} : vector<8x128xf32> to vector<8x96xf32>
    %57 = arith.negf %56 : vector<8x96xf32>
    %58 = math.exp %57 : vector<8x96xf32>
    %cst_18 = arith.constant 1.000000e+00 : f32
    %59 = vector.broadcast %cst_18 : f32 to vector<8x96xf32>
    %60 = arith.addf %59, %58 : vector<8x96xf32>
    %61 = arith.divf %59, %60 : vector<8x96xf32>
    %62 = vector.extract_strided_slice %55 {offsets = [0, 96], sizes = [8, 32], strides = [1, 1]} : vector<8x128xf32> to vector<8x32xf32>
    %63 = math.tanh %62 : vector<8x32xf32>
    %64 = vector.extract_strided_slice %61 {offsets = [0, 0], sizes = [8, 32], strides = [1, 1]} : vector<8x96xf32> to vector<8x32xf32>
    %65 = vector.extract_strided_slice %61 {offsets = [0, 32], sizes = [8, 32], strides = [1, 1]} : vector<8x96xf32> to vector<8x32xf32>
    %66 = vector.extract_strided_slice %61 {offsets = [0, 64], sizes = [8, 32], strides = [1, 1]} : vector<8x96xf32> to vector<8x32xf32>
    %67 = arith.mulf %65, %49 : vector<8x32xf32>
    %68 = arith.mulf %64, %63 : vector<8x32xf32>
    %69 = arith.addf %67, %68 : vector<8x32xf32>
    %70 = math.tanh %69 : vector<8x32xf32>
    %71 = arith.mulf %66, %70 : vector<8x32xf32>
    %c16 = arith.constant 16 : index
    %c0_19 = arith.constant 0 : index
    %72 = vector.load %arg9[%c16, %c0_19] : memref<64x32xf32, #tpu.memory_space<vmem>>, vector<8x32xf32>
    tpu.vector_store %arg9[%c16, %c0_19], %71 {strides = array<i32>} : memref<64x32xf32, #tpu.memory_space<vmem>>, vector<8x32xf32>,
    %73 = vector.extract_strided_slice %7 {offsets = [24, 0], sizes = [8, 128], strides = [1, 1]} : vector<64x128xf32> to vector<8x128xf32>
    %cst_20 = arith.constant dense<0.000000e+00> : vector<8x128xf32>
    %74 = tpu.matmul %71, %12, %cst_20 {dimension_numbers = #tpu.dot_dimension_numbers<[1], [0], [0], [1], [0, 0, 1, 1], [], []>} : vector<8x32xf32>, vector<32x128xf32>, vector<8x128xf32> -> vector<8x128xf32>
    %75 = arith.addf %73, %74 : vector<8x128xf32>
    %76 = vector.extract_strided_slice %75 {offsets = [0, 0], sizes = [8, 96], strides = [1, 1]} : vector<8x128xf32> to vector<8x96xf32>
    %77 = arith.negf %76 : vector<8x96xf32>
    %78 = math.exp %77 : vector<8x96xf32>
    %cst_21 = arith.constant 1.000000e+00 : f32
    %79 = vector.broadcast %cst_21 : f32 to vector<8x96xf32>
    %80 = arith.addf %79, %78 : vector<8x96xf32>
    %81 = arith.divf %79, %80 : vector<8x96xf32>
    %82 = vector.extract_strided_slice %75 {offsets = [0, 96], sizes = [8, 32], strides = [1, 1]} : vector<8x128xf32> to vector<8x32xf32>
    %83 = math.tanh %82 : vector<8x32xf32>
    %84 = vector.extract_strided_slice %81 {offsets = [0, 0], sizes = [8, 32], strides = [1, 1]} : vector<8x96xf32> to vector<8x32xf32>
    %85 = vector.extract_strided_slice %81 {offsets = [0, 32], sizes = [8, 32], strides = [1, 1]} : vector<8x96xf32> to vector<8x32xf32>
    %86 = vector.extract_strided_slice %81 {offsets = [0, 64], sizes = [8, 32], strides = [1, 1]} : vector<8x96xf32> to vector<8x32xf32>
    %87 = arith.mulf %85, %69 : vector<8x32xf32>
    %88 = arith.mulf %84, %83 : vector<8x32xf32>
    %89 = arith.addf %87, %88 : vector<8x32xf32>
    %90 = math.tanh %89 : vector<8x32xf32>
    %91 = arith.mulf %86, %90 : vector<8x32xf32>
    %c24 = arith.constant 24 : index
    %c0_22 = arith.constant 0 : index
    %92 = vector.load %arg9[%c24, %c0_22] : memref<64x32xf32, #tpu.memory_space<vmem>>, vector<8x32xf32>
    tpu.vector_store %arg9[%c24, %c0_22], %91 {strides = array<i32>} : memref<64x32xf32, #tpu.memory_space<vmem>>, vector<8x32xf32>,
    %93 = vector.extract_strided_slice %7 {offsets = [32, 0], sizes = [8, 128], strides = [1, 1]} : vector<64x128xf32> to vector<8x128xf32>
    %cst_23 = arith.constant dense<0.000000e+00> : vector<8x128xf32>
    %94 = tpu.matmul %91, %12, %cst_23 {dimension_numbers = #tpu.dot_dimension_numbers<[1], [0], [0], [1], [0, 0, 1, 1], [], []>} : vector<8x32xf32>, vector<32x128xf32>, vector<8x128xf32> -> vector<8x128xf32>
    %95 = arith.addf %93, %94 : vector<8x128xf32>
    %96 = vector.extract_strided_slice %95 {offsets = [0, 0], sizes = [8, 96], strides = [1, 1]} : vector<8x128xf32> to vector<8x96xf32>
    %97 = arith.negf %96 : vector<8x96xf32>
    %98 = math.exp %97 : vector<8x96xf32>
    %cst_24 = arith.constant 1.000000e+00 : f32
    %99 = vector.broadcast %cst_24 : f32 to vector<8x96xf32>
    %100 = arith.addf %99, %98 : vector<8x96xf32>
    %101 = arith.divf %99, %100 : vector<8x96xf32>
    %102 = vector.extract_strided_slice %95 {offsets = [0, 96], sizes = [8, 32], strides = [1, 1]} : vector<8x128xf32> to vector<8x32xf32>
    %103 = math.tanh %102 : vector<8x32xf32>
    %104 = vector.extract_strided_slice %101 {offsets = [0, 0], sizes = [8, 32], strides = [1, 1]} : vector<8x96xf32> to vector<8x32xf32>
    %105 = vector.extract_strided_slice %101 {offsets = [0, 32], sizes = [8, 32], strides = [1, 1]} : vector<8x96xf32> to vector<8x32xf32>
    %106 = vector.extract_strided_slice %101 {offsets = [0, 64], sizes = [8, 32], strides = [1, 1]} : vector<8x96xf32> to vector<8x32xf32>
    %107 = arith.mulf %105, %89 : vector<8x32xf32>
    %108 = arith.mulf %104, %103 : vector<8x32xf32>
    %109 = arith.addf %107, %108 : vector<8x32xf32>
    %110 = math.tanh %109 : vector<8x32xf32>
    %111 = arith.mulf %106, %110 : vector<8x32xf32>
    %c32 = arith.constant 32 : index
    %c0_25 = arith.constant 0 : index
    %112 = vector.load %arg9[%c32, %c0_25] : memref<64x32xf32, #tpu.memory_space<vmem>>, vector<8x32xf32>
    tpu.vector_store %arg9[%c32, %c0_25], %111 {strides = array<i32>} : memref<64x32xf32, #tpu.memory_space<vmem>>, vector<8x32xf32>,
    %113 = vector.extract_strided_slice %7 {offsets = [40, 0], sizes = [8, 128], strides = [1, 1]} : vector<64x128xf32> to vector<8x128xf32>
    %cst_26 = arith.constant dense<0.000000e+00> : vector<8x128xf32>
    %114 = tpu.matmul %111, %12, %cst_26 {dimension_numbers = #tpu.dot_dimension_numbers<[1], [0], [0], [1], [0, 0, 1, 1], [], []>} : vector<8x32xf32>, vector<32x128xf32>, vector<8x128xf32> -> vector<8x128xf32>
    %115 = arith.addf %113, %114 : vector<8x128xf32>
    %116 = vector.extract_strided_slice %115 {offsets = [0, 0], sizes = [8, 96], strides = [1, 1]} : vector<8x128xf32> to vector<8x96xf32>
    %117 = arith.negf %116 : vector<8x96xf32>
    %118 = math.exp %117 : vector<8x96xf32>
    %cst_27 = arith.constant 1.000000e+00 : f32
    %119 = vector.broadcast %cst_27 : f32 to vector<8x96xf32>
    %120 = arith.addf %119, %118 : vector<8x96xf32>
    %121 = arith.divf %119, %120 : vector<8x96xf32>
    %122 = vector.extract_strided_slice %115 {offsets = [0, 96], sizes = [8, 32], strides = [1, 1]} : vector<8x128xf32> to vector<8x32xf32>
    %123 = math.tanh %122 : vector<8x32xf32>
    %124 = vector.extract_strided_slice %121 {offsets = [0, 0], sizes = [8, 32], strides = [1, 1]} : vector<8x96xf32> to vector<8x32xf32>
    %125 = vector.extract_strided_slice %121 {offsets = [0, 32], sizes = [8, 32], strides = [1, 1]} : vector<8x96xf32> to vector<8x32xf32>
    %126 = vector.extract_strided_slice %121 {offsets = [0, 64], sizes = [8, 32], strides = [1, 1]} : vector<8x96xf32> to vector<8x32xf32>
    %127 = arith.mulf %125, %109 : vector<8x32xf32>
    %128 = arith.mulf %124, %123 : vector<8x32xf32>
    %129 = arith.addf %127, %128 : vector<8x32xf32>
    %130 = math.tanh %129 : vector<8x32xf32>
    %131 = arith.mulf %126, %130 : vector<8x32xf32>
    %c40 = arith.constant 40 : index
    %c0_28 = arith.constant 0 : index
    %132 = vector.load %arg9[%c40, %c0_28] : memref<64x32xf32, #tpu.memory_space<vmem>>, vector<8x32xf32>
    tpu.vector_store %arg9[%c40, %c0_28], %131 {strides = array<i32>} : memref<64x32xf32, #tpu.memory_space<vmem>>, vector<8x32xf32>,
    %133 = vector.extract_strided_slice %7 {offsets = [48, 0], sizes = [8, 128], strides = [1, 1]} : vector<64x128xf32> to vector<8x128xf32>
    %cst_29 = arith.constant dense<0.000000e+00> : vector<8x128xf32>
    %134 = tpu.matmul %131, %12, %cst_29 {dimension_numbers = #tpu.dot_dimension_numbers<[1], [0], [0], [1], [0, 0, 1, 1], [], []>} : vector<8x32xf32>, vector<32x128xf32>, vector<8x128xf32> -> vector<8x128xf32>
    %135 = arith.addf %133, %134 : vector<8x128xf32>
    %136 = vector.extract_strided_slice %135 {offsets = [0, 0], sizes = [8, 96], strides = [1, 1]} : vector<8x128xf32> to vector<8x96xf32>
    %137 = arith.negf %136 : vector<8x96xf32>
    %138 = math.exp %137 : vector<8x96xf32>
    %cst_30 = arith.constant 1.000000e+00 : f32
    %139 = vector.broadcast %cst_30 : f32 to vector<8x96xf32>
    %140 = arith.addf %139, %138 : vector<8x96xf32>
    %141 = arith.divf %139, %140 : vector<8x96xf32>
    %142 = vector.extract_strided_slice %135 {offsets = [0, 96], sizes = [8, 32], strides = [1, 1]} : vector<8x128xf32> to vector<8x32xf32>
    %143 = math.tanh %142 : vector<8x32xf32>
    %144 = vector.extract_strided_slice %141 {offsets = [0, 0], sizes = [8, 32], strides = [1, 1]} : vector<8x96xf32> to vector<8x32xf32>
    %145 = vector.extract_strided_slice %141 {offsets = [0, 32], sizes = [8, 32], strides = [1, 1]} : vector<8x96xf32> to vector<8x32xf32>
    %146 = vector.extract_strided_slice %141 {offsets = [0, 64], sizes = [8, 32], strides = [1, 1]} : vector<8x96xf32> to vector<8x32xf32>
    %147 = arith.mulf %145, %129 : vector<8x32xf32>
    %148 = arith.mulf %144, %143 : vector<8x32xf32>
    %149 = arith.addf %147, %148 : vector<8x32xf32>
    %150 = math.tanh %149 : vector<8x32xf32>
    %151 = arith.mulf %146, %150 : vector<8x32xf32>
    %c48 = arith.constant 48 : index
    %c0_31 = arith.constant 0 : index
    %152 = vector.load %arg9[%c48, %c0_31] : memref<64x32xf32, #tpu.memory_space<vmem>>, vector<8x32xf32>
    tpu.vector_store %arg9[%c48, %c0_31], %151 {strides = array<i32>} : memref<64x32xf32, #tpu.memory_space<vmem>>, vector<8x32xf32>,
    %153 = vector.extract_strided_slice %7 {offsets = [56, 0], sizes = [8, 128], strides = [1, 1]} : vector<64x128xf32> to vector<8x128xf32>
    %cst_32 = arith.constant dense<0.000000e+00> : vector<8x128xf32>
    %154 = tpu.matmul %151, %12, %cst_32 {dimension_numbers = #tpu.dot_dimension_numbers<[1], [0], [0], [1], [0, 0, 1, 1], [], []>} : vector<8x32xf32>, vector<32x128xf32>, vector<8x128xf32> -> vector<8x128xf32>
    %155 = arith.addf %153, %154 : vector<8x128xf32>
    %156 = vector.extract_strided_slice %155 {offsets = [0, 0], sizes = [8, 96], strides = [1, 1]} : vector<8x128xf32> to vector<8x96xf32>
    %157 = arith.negf %156 : vector<8x96xf32>
    %158 = math.exp %157 : vector<8x96xf32>
    %cst_33 = arith.constant 1.000000e+00 : f32
    %159 = vector.broadcast %cst_33 : f32 to vector<8x96xf32>
    %160 = arith.addf %159, %158 : vector<8x96xf32>
    %161 = arith.divf %159, %160 : vector<8x96xf32>
    %162 = vector.extract_strided_slice %155 {offsets = [0, 96], sizes = [8, 32], strides = [1, 1]} : vector<8x128xf32> to vector<8x32xf32>
    %163 = math.tanh %162 : vector<8x32xf32>
    %164 = vector.extract_strided_slice %161 {offsets = [0, 0], sizes = [8, 32], strides = [1, 1]} : vector<8x96xf32> to vector<8x32xf32>
    %165 = vector.extract_strided_slice %161 {offsets = [0, 32], sizes = [8, 32], strides = [1, 1]} : vector<8x96xf32> to vector<8x32xf32>
    %166 = vector.extract_strided_slice %161 {offsets = [0, 64], sizes = [8, 32], strides = [1, 1]} : vector<8x96xf32> to vector<8x32xf32>
    %167 = arith.mulf %165, %149 : vector<8x32xf32>
    %168 = arith.mulf %164, %163 : vector<8x32xf32>
    %169 = arith.addf %167, %168 : vector<8x32xf32>
    %170 = math.tanh %169 : vector<8x32xf32>
    %171 = arith.mulf %166, %170 : vector<8x32xf32>
    %c56 = arith.constant 56 : index
    %c0_34 = arith.constant 0 : index
    %172 = vector.load %arg9[%c56, %c0_34] : memref<64x32xf32, #tpu.memory_space<vmem>>, vector<8x32xf32>
    tpu.vector_store %arg9[%c56, %c0_34], %171 {strides = array<i32>} : memref<64x32xf32, #tpu.memory_space<vmem>>, vector<8x32xf32>,
    %c0_35 = arith.constant 0 : index
    %c0_36 = arith.constant 0 : index
    %c0_37 = arith.constant 0 : index
    %173 = vector.load %arg8[%c0_35, %c0_36, %c0_37] : memref<2x8x32xf32, #tpu.memory_space<vmem>>, vector<1x8x32xf32>
    %174 = vector.shape_cast %173 : vector<1x8x32xf32> to vector<8x32xf32>
    %175 = vector.shape_cast %171 : vector<8x32xf32> to vector<1x8x32xf32>
    tpu.vector_store %arg8[%c0_35, %c0_36, %c0_37], %175 {strides = array<i32>} : memref<2x8x32xf32, #tpu.memory_space<vmem>>, vector<1x8x32xf32>,
    %c1_38 = arith.constant 1 : index
    %c0_39 = arith.constant 0 : index
    %c0_40 = arith.constant 0 : index
    %176 = vector.load %arg8[%c1_38, %c0_39, %c0_40] : memref<2x8x32xf32, #tpu.memory_space<vmem>>, vector<1x8x32xf32>
    %177 = vector.shape_cast %176 : vector<1x8x32xf32> to vector<8x32xf32>
    %178 = vector.shape_cast %169 : vector<8x32xf32> to vector<1x8x32xf32>
    tpu.vector_store %arg8[%c1_38, %c0_39, %c0_40], %178 {strides = array<i32>} : memref<2x8x32xf32, #tpu.memory_space<vmem>>, vector<1x8x32xf32>,
    %c0_41 = arith.constant 0 : index
    %c0_42 = arith.constant 0 : index
    %179 = vector.load %arg9[%c0_41, %c0_42] : memref<64x32xf32, #tpu.memory_space<vmem>>, vector<64x32xf32>
    %c0_43 = arith.constant 0 : index
    %c0_44 = arith.constant 0 : index
    %180 = vector.load %arg5[%c0_43, %c0_44] : memref<32x128xf32, #tpu.memory_space<vmem>>, vector<32x128xf32>
    %cst_45 = arith.constant dense<0.000000e+00> : vector<64x128xf32>
    %181 = tpu.matmul %179, %180, %cst_45 {dimension_numbers = #tpu.dot_dimension_numbers<[1], [0], [0], [1], [0, 0, 1, 1], [], []>} : vector<64x32xf32>, vector<32x128xf32>, vector<64x128xf32> -> vector<64x128xf32>
    %c0_46 = arith.constant 0 : index
    %c0_47 = arith.constant 0 : index
    %182 = vector.load %arg6[%c0_46, %c0_47] : memref<1x128xf32, #tpu.memory_space<vmem>>, vector<1x128xf32>
    %183 = vector.broadcast %182 : vector<1x128xf32> to vector<64x128xf32>
    %184 = arith.addf %181, %183 : vector<64x128xf32>
    %c0_48 = arith.constant 0 : index
    %c0_49 = arith.constant 0 : index
    %185 = vector.load %arg7[%c0_48, %c0_49] : memref<64x128xf32, #tpu.memory_space<vmem>>, vector<64x128xf32>
    tpu.vector_store %arg7[%c0_48, %c0_49], %184 {strides = array<i32>} : memref<64x128xf32, #tpu.memory_space<vmem>>, vector<64x128xf32>,
    return
  }
  func.func @transform_0(%arg0: i32) -> (i32, i32) {
    %c0_i32 = arith.constant 0 : i32
    %c0_i32_0 = arith.constant 0 : i32
    %c0_i32_1 = arith.constant 0 : i32
    return %c0_i32, %c0_i32_0 : i32, i32
  }
  func.func @transform_1(%arg0: i32) -> (i32, i32, i32) {
    %c0_i32 = arith.constant 0 : i32
    %c0_i32_0 = arith.constant 0 : i32
    %c0_i32_1 = arith.constant 0 : i32
    %c0_i32_2 = arith.constant 0 : i32
    return %c0_i32, %c0_i32_0, %c0_i32_1 : i32, i32, i32
  }
  func.func @transform_2(%arg0: i32) -> (i32, i32) {
    %c0_i32 = arith.constant 0 : i32
    %c0_i32_0 = arith.constant 0 : i32
    %c0_i32_1 = arith.constant 0 : i32
    return %c0_i32, %c0_i32_0 : i32, i32
  }
  func.func @transform_3(%arg0: i32) -> (i32, i32) {
    %c0_i32 = arith.constant 0 : i32
    %c0_i32_0 = arith.constant 0 : i32
    %c0_i32_1 = arith.constant 0 : i32
    return %c0_i32, %c0_i32_0 : i32, i32
  }
  func.func @transform_4(%arg0: i32) -> (i32, i32) {
    %c0_i32 = arith.constant 0 : i32
    %c0_i32_0 = arith.constant 0 : i32
    %c0_i32_1 = arith.constant 0 : i32
    return %c0_i32, %c0_i32_0 : i32, i32
  }
  func.func @transform_5(%arg0: i32) -> (i32, i32) {
    %c0_i32 = arith.constant 0 : i32
    %c0_i32_0 = arith.constant 0 : i32
    %c0_i32_1 = arith.constant 0 : i32
    return %c0_i32, %c0_i32_0 : i32, i32
  }
  func.func @transform_6(%arg0: i32) -> (i32, i32) {
    %c0_i32 = arith.constant 0 : i32
    %c0_i32_0 = arith.constant 0 : i32
    %c0_i32_1 = arith.constant 0 : i32
    return %c0_i32, %c0_i32_0 : i32, i32
  }
  func.func @transform_7(%arg0: i32) -> (i32, i32, i32) {
    %c0_i32 = arith.constant 0 : i32
    %c0_i32_0 = arith.constant 0 : i32
    %c0_i32_1 = arith.constant 0 : i32
    %c0_i32_2 = arith.constant 0 : i32
    return %c0_i32, %c0_i32_0, %c0_i32_1 : i32, i32, i32
  }
}

</mosaic_0001>

<bundles_post_ra>
// kernel: char_decoder_forward.1
= control target key start
LH: loop header
LB: loop body
LE: loop exit
PB: predicated region body
PF: predicated region fallthrough
CT: control target
= control target key end

     0   :  { %v1592_v0 = vmov 0   ;;  %v1593_v13 = vmov 0.0|0.0   ;;  %s1594_s22 = smov 32   ;;  %v33_v15 = vlaneseq  ;;  %vm87_vm0 = vcmask 261120   ;;  %s1598_s8 = smov 96   ;;  %s1901_s0 = inlined_call_operand.vmem [shape: s32[64,1], index: 0, kind: input, shape index: {}]   ;;  %s1902_s2 = inlined_call_operand.vmem [shape: f32[32,128], index: 2, kind: input, shape index: {}]   ;;  %s1903_s1 = inlined_call_operand.vmem [shape: f32[2,8,32], index: 1, kind: input, shape index: {}]   ;;  %s1904_s3 = inlined_call_operand.vmem [shape: f32[32,128], index: 3, kind: input, shape index: {}]   ;;  %s1905_s4 = inlined_call_operand.vmem [shape: f32[32,128], index: 4, kind: input, shape index: {}]   ;;  %s1906_s5 = inlined_call_operand.vmem [shape: f32[1,128], index: 5, kind: input, shape index: {}]   ;;  %s1907_s6 = inlined_call_operand.vmem [shape: f32[64,128], index: 6, kind: output, shape index: {0}]   ;;  %s1908_s7 = inlined_call_operand.vmem [shape: f32[2,8,32], index: 7, kind: output, shape index: {1}]  }
   0x1   :  { %1527 = vset.pattern.permute.xlu1 %v1592_v0  ;;  %1526 = vset.pattern.permute.xlu0 %v1592_v0  ;;  %v31_v1 = vld [vmem:[%s1901_s0 + $0x30] sm:$0xff]  ;;  %v29_v2 = vld [vmem:[%s1901_s0 + $0x20] sm:$0xff]  ;;  %v32_v3 = vld [vmem:[%s1901_s0 + $0x38] sm:$0xff]  ;;  %v1595_v21 = vmov 0.0   ;;  %vm1596_vm7 = vmmov 0  }
   0x2   :  { %54 = vperm.xlu1 %1527, %v31_v1   ;;  %48 = vperm.xlu0 %1526, %v29_v2   ;;  %v30_v4 = vld [vmem:[%s1901_s0 + $0x28] sm:$0xff]  ;;  %v83_v5 = vld [vmem:[%s1902_s2] sm:$0xff]  ;;  %v85_v7 = vld [vmem:[%s1902_s2 + $0x10] sm:$0xff]  ;;  %v1675_v16 = vand.u32 127, %v33_v15 }
   0x3   :  { %v84_v6 = vld [vmem:[%s1902_s2 + $0x8] sm:$0xff]  ;;  %v86_v9 = vld [vmem:[%s1902_s2 + $0x18] sm:$0xff]  ;;  %v25_v12 = vld [vmem:[%s1901_s0] sm:$0xff] }
   0x4   :  { %v1451_v8 = vpack.c.bf16 %v84_v6, %v83_v5  ;;  %v1455_v10 = vpack.c.bf16 %v86_v9, %v85_v7  ;;  %v26_v11 = vld [vmem:[%s1901_s0 + $0x8] sm:$0xff]  ;;  %v220_v19 = vld [vmem:[%s1904_s3] sm:$0xff]  ;;  %v222_v26 = vld [vmem:[%s1904_s3 + $0x10] sm:$0xff] }
   0x5   :  { %v1232_v14 = vld [vmem:[%s1903_s1 + $0x8] sm:$0xff]  ;;  %v223_v27 = vld [vmem:[%s1904_s3 + $0x18] sm:$0xff]  ;;  %v217_v36 = vld [vmem:[%s1903_s1] sm:$0xff]  ;;  %s1597_s1 = smov 64  }
   0x6   :  { %57 = vperm.xlu1 %1527, %v32_v3   ;;  %51 = vperm.xlu0 %1526, %v30_v4   ;;  %v221_v20 = vld [vmem:[%s1904_s3 + $0x8] sm:$0xff]  ;;  %v1702_v32 = vpack.c.bf16 %v223_v27, %v222_v26  ;;  %v27_v7 = vld [vmem:[%s1901_s0 + $0x10] sm:$0xff] }
   0x7   :  { %1515 = vmatprep.subr.bf16.mxu1 %v1451_v8  ;;  %1452 = vmatprep.subr.bf16.mxu0 %v1451_v8  ;;  %v1687_v25 = vpack.c.bf16 %v221_v20, %v220_v19 }
   0x8   :  { %1517 = vmatpush3.bf16.msra.mxu1 %v1451_v8  ;;  %1454 = vmatpush3.bf16.msra.mxu0 %v1451_v8 }
   0x9   :  { %1516 = vmatprep.subr.bf16.mxu1 %v1455_v10  ;;  %1456 = vmatprep.subr.bf16.mxu0 %v1455_v10 }
   0xa   :  { %39 = vperm.xlu1 %1527, %v26_v11   ;;  %36 = vperm.xlu0 %1526, %v25_v12   ;;  %v28_v12 = vld [vmem:[%s1901_s0 + $0x18] sm:$0xff] }
   0xc   :  { %1518 = vmatpush3.bf16.msra.mxu1 %v1455_v10  ;;  %1458 = vmatpush3.bf16.msra.mxu0 %v1455_v10 }
   0xd   :  { %1459 = vmatprep.subr.bf16.mxu1 %v1593_v13  ;;  %1471 = vmatprep.subr.bf16.mxu0 %v1593_v13 }
   0xe   :  { %306 = vrot.lane.b32.xlu1 %v1232_v14, %s1594_s22 }
  0x81   :  { %v55_v17 = vpop.permute.xlu1 %54  ;;  %v49_v18 = vpop.permute.xlu0 %48 }
  0x82   :  { %vm63_vm1 = vcmp.eq.s32.totalorder %v1675_v16, %v49_v18  ;;  %vm65_vm2 = vcmp.eq.s32.totalorder %v1675_v16, %v55_v17 }
  0x83   :  { %v1220_v22 = vsel %vm63_vm1, 1.0, %v1595_v21  ;;  %v1222_v29 = vsel %vm65_vm2, 1.0, %v1595_v21 }
  0x84   :  { %1337 = vmatprep.mubr.msk.f32.mxu1 %vm87_vm0, %v1220_v22 }
  0x85   :  { %v58_v23 = vpop.permute.xlu1 %57  ;;  %v52_v24 = vpop.permute.xlu0 %51 }
  0x86   :  { %vm64_vm3 = vcmp.eq.s32.totalorder %v1675_v16, %v52_v24  ;;  %vm66_vm4 = vcmp.eq.s32.totalorder %v1675_v16, %v58_v23 }
  0x87   :  { %v1221_v28 = vsel %vm64_vm3, 1.0, %v1595_v21  ;;  %v1223_v33 = vsel %vm66_vm4, 1.0, %v1595_v21 }
  0x88   :  { %1338 = vmatmul.mubr.msk.f32.vlgmr.msra.gmra.mrb[0].mxu1 %vm87_vm0, %v1221_v28 }
  0x89   :  { %1461 = vmatpush3.bf16.msra.mxu1 %v1687_v25  ;;  %1340 = vmatprep.mubr.msk.f32.mxu1 %vm87_vm0, %v1222_v29  ;;  %v40_v30 = vpop.permute.xlu1 %39  ;;  %v37_v31 = vpop.permute.xlu0 %36 }
  0x8a   :  { %vm60_vm5 = vcmp.eq.s32.totalorder %v1675_v16, %v40_v30  ;;  %vm59_vm6 = vcmp.eq.s32.totalorder %v1675_v16, %v37_v31  ;;  %1462 = vmatprep.subr.bf16.mxu1 %v1593_v13 }
  0x8b   :  { %v1217_v34 = vsel %vm60_vm5, 1.0, %v1595_v21  ;;  %v1216_v35 = vsel %vm59_vm6, 1.0, %v1595_v21 }
  0x8c   :  { %1331 = vmatprep.mubr.msk.f32.mxu0 %vm87_vm0, %v1216_v35  ;;  %1341 = vmatmul.mubr.msk.f32.gmra.mrb[2].mxu1 %vm87_vm0, %v1223_v33 }
  0x8d   :  { %1464 = vmatpush3.bf16.msra.mxu1 %v1702_v32  ;;  %1332 = vmatmul.mubr.msk.f32.vlgmr.msra.gmra.mrb[0].mxu0 %vm87_vm0, %v1217_v34  ;;  %v307_v53 = vpop.permute.xlu1 %306 }
  0x8e   :  { %1351 = vmatprep.mubr.msk.f32.mxu1 %vm1596_vm7, %v1595_v21  ;;  %1465 = vmatprep.subr.bf16.mxu1 %v1593_v13 }
  0x8f   :  { %1473 = vmatpush3.bf16.msra.mxu0 %v1687_v25 }
  0x90   :  { %1352 = vmatmul.mubr.msk.f32.vlgmr.msra.gmra.mrb[4].mxu1 %vm87_vm0, %v217_v36  ;;  %1474 = vmatprep.subr.bf16.mxu0 %v1593_v13 }
  0x91   :  { %1467 = vmatpush3.bf16.msra.mxu1 %v1687_v25  ;;  %1362 = vmatprep.mubr.msk.f32.mxu1 %vm1596_vm7, %v1595_v21 }
  0x92   :  { %1468 = vmatprep.subr.bf16.mxu1 %v1593_v13 }
  0x93   :  { %1476 = vmatpush3.bf16.msra.mxu0 %v1702_v32 }
  0x94   :  { %1483 = vmatprep.subr.bf16.mxu0 %v1593_v13 }
  0x95   :  { %1470 = vmatpush3.bf16.msra.mxu1 %v1702_v32 }
  0x96   :  { %1477 = vmatprep.subr.bf16.mxu1 %v1593_v13 }
 0x15b   :  { %v1731_v37 = vpop.f32.mrb[0].mxu1 }
 0x15c   :  { %v1733_v38 = vpop.f32.mrb[1].mxu1 }
 0x15f   :  { %v1735_v39 = vpop.f32.mrb[2].mxu1 }
 0x160   :  { %v1333_v40 = vpop.f32.mrb[0].mxu0  ;;  %v1737_v41 = vpop.f32.mrb[3].mxu1 }
 0x161   :  { %v178_v42 = vpop.f32.mrb[1].mxu0 }
 0x163   :  { %v293_v43 = vpop.f32.mrb[4].mxu1 }
 0x164   :  { %v297_v44 = vadd.f32 %v293_v43, %v178_v42  ;;  %v1353_v45 = vpop.f32.mrb[5].mxu1 }
 0x166   :  { %1528 = vtanh.f32 %v297_v44  ;;  %v1234_v47 = vmul.f32 -1.442695, %v297_v44 }
 0x168   :  { %1530 = vpow2.f32 %v1234_v47 }
 0x170   :  { %v1529_v46 = vpop.eup %1528 }
 0x171   :  { %311 = vrot.lane.b32.xlu0 %v1529_v46, %s1594_s22 }
 0x172   :  { %v1531_v48 = vpop.eup %1530 }
 0x173   :  { %v301_v49 = vadd.f32 1.0, %v1531_v48 }
 0x175   :  { %1532 = vrcp.f32 %v301_v49 }
 0x17f   :  { %v1533_v50 = vpop.eup %1532 }
 0x180   :  { %v309_v54 = vmul.f32 %v1533_v50, %v307_v53 }
 0x1e3   :  { %v312_v51 = vpop.permute.xlu0 %311 }
 0x1e4   :  { %v314_v52 = vmul.f32 %v1533_v50, %v312_v51 }
 0x1e6   :  { %316 = vrot.lane.b32.xlu0 %v314_v52, %s1594_s22 }
 0x258   :  { %v317_v55 = vpop.permute.xlu0 %316 }
 0x259   :  { %v319_v56 = vadd.f32 %v317_v55, %v309_v54 }
 0x25b   :  { %1534 = vtanh.f32 %v319_v56 }
 0x265   :  { %v1535_v57 = vpop.eup %1534 }
 0x266   :  { %322 = vrot.lane.b32.xlu1 %v1535_v57, %s1594_s22 }
 0x2d8   :  { %v323_v58 = vpop.permute.xlu1 %322 }
 0x2d9   :  { %v325_v59 = vmul.f32 %v1533_v50, %v323_v58 }
 0x2db   :  { %327 = vrot.lane.b32.xlu0 %v325_v59, %s1597_s1 }
 0x34d   :  { %v328_v60 = vpop.permute.xlu0 %327 }
 0x34e   :  { %330 = vst.msk [vmem:[#allocation2] sm:$0xff] %vm87_vm0, %v328_v60  ;;  %1363 = vmatmul.mubr.msk.f32.vlgmr.msra.gmra.mrb[6].mxu1 %vm87_vm0, %v328_v60 }
 0x34f   :  { %1479 = vmatpush3.bf16.msra.mxu1 %v1687_v25  ;;  %1384 = vmatprep.mubr.msk.f32.mxu1 %vm1596_vm7, %v1595_v21 }
 0x350   :  { %1480 = vmatprep.subr.bf16.mxu1 %v1593_v13 }
 0x353   :  { %1482 = vmatpush3.bf16.msra.mxu1 %v1702_v32 }
 0x354   :  { %1489 = vmatprep.subr.bf16.mxu1 %v1593_v13 }
 0x421   :  { %v399_v61 = vpop.f32.mrb[6].mxu1 }
 0x422   :  { %v403_v62 = vadd.f32 %v1333_v40, %v399_v61  ;;  %v1364_v63 = vpop.f32.mrb[7].mxu1 }
 0x424   :  { %1536 = vtanh.f32 %v403_v62  ;;  %v1236_v1 = vmul.f32 -1.442695, %v403_v62 }
 0x426   :  { %1538 = vpow2.f32 %v1236_v1 }
 0x42e   :  { %v1537_v0 = vpop.eup %1536 }
 0x42f   :  { %413 = vrot.lane.b32.xlu1 %v1537_v0, %s1594_s22 }
 0x430   :  { %v1539_v2 = vpop.eup %1538 }
 0x431   :  { %v407_v3 = vadd.f32 1.0, %v1539_v2 }
 0x433   :  { %1540 = vrcp.f32 %v407_v3 }
 0x43d   :  { %v1541_v4 = vpop.eup %1540 }
 0x43e   :  { %v411_v8 = vmul.f32 %v1541_v4, %v319_v56 }
 0x4a1   :  { %v414_v5 = vpop.permute.xlu1 %413 }
 0x4a2   :  { %v416_v6 = vmul.f32 %v1541_v4, %v414_v5 }
 0x4a4   :  { %418 = vrot.lane.b32.xlu0 %v416_v6, %s1594_s22 }
 0x4a8   :  { %42 = vperm.xlu0 %1526, %v27_v7  }
 0x516   :  { %v419_v9 = vpop.permute.xlu0 %418 }
 0x517   :  { %v421_v10 = vadd.f32 %v419_v9, %v411_v8 }
 0x519   :  { %1542 = vtanh.f32 %v421_v10 }
 0x523   :  { %v1543_v11 = vpop.eup %1542 }
 0x524   :  { %424 = vrot.lane.b32.xlu1 %v1543_v11, %s1594_s22 }
 0x527   :  { %v43_v14 = vpop.permute.xlu0 %42 }
 0x528   :  { %vm61_vm8 = vcmp.eq.s32.totalorder %v1675_v16, %v43_v14  ;;  %45 = vperm.xlu1 %1527, %v28_v12  }
 0x529   :  { %v1218_v15 = vsel %vm61_vm8, 1.0, %v1595_v21 }
 0x52a   :  { %1334 = vmatprep.mubr.msk.f32.mxu0 %vm87_vm0, %v1218_v15 }
 0x596   :  { %v425_v17 = vpop.permute.xlu1 %424 }
 0x597   :  { %v427_v18 = vmul.f32 %v1541_v4, %v425_v17 }
 0x599   :  { %429 = vrot.lane.b32.xlu0 %v427_v18, %s1597_s1 }
 0x5a7   :  { %v46_v19 = vpop.permute.xlu1 %45 }
 0x5a8   :  { %vm62_vm9 = vcmp.eq.s32.totalorder %v1675_v16, %v46_v19 }
 0x5a9   :  { %v1219_v20 = vsel %vm62_vm9, 1.0, %v1595_v21 }
 0x5aa   :  { %1335 = vmatmul.mubr.msk.f32.gmra.mrb[2].mxu0 %vm87_vm0, %v1219_v20 }
 0x5ab   :  { %1373 = vmatprep.mubr.msk.f32.mxu0 %vm1596_vm7, %v1595_v21 }
 0x60b   :  { %v430_v22 = vpop.permute.xlu0 %429 }
 0x60c   :  { %432 = vst.msk [vmem:[#allocation2 + $0x8] sm:$0xff] %vm87_vm0, %v430_v22  ;;  %1374 = vmatmul.mubr.msk.f32.vlgmr.msra.gmra.mrb[4].mxu0 %vm87_vm0, %v430_v22 }
 0x60d   :  { %1485 = vmatpush3.bf16.msra.mxu0 %v1687_v25  ;;  %1395 = vmatprep.mubr.msk.f32.mxu0 %vm1596_vm7, %v1595_v21 }
 0x60e   :  { %1486 = vmatprep.subr.bf16.mxu0 %v1593_v13 }
 0x611   :  { %1488 = vmatpush3.bf16.msra.mxu0 %v1702_v32 }
 0x612   :  { %1495 = vmatprep.subr.bf16.mxu0 %v1593_v13 }
 0x67d   :  { %v1336_v16 = vpop.f32.mrb[2].mxu0 }
 0x67e   :  { %v188_v23 = vpop.f32.mrb[3].mxu0 }
 0x6df   :  { %v501_v24 = vpop.f32.mrb[4].mxu0 }
 0x6e0   :  { %v505_v26 = vadd.f32 %v501_v24, %v188_v23  ;;  %v1375_v27 = vpop.f32.mrb[5].mxu0 }
 0x6e2   :  { %1544 = vtanh.f32 %v505_v26  ;;  %v1238_v29 = vmul.f32 -1.442695, %v505_v26 }
 0x6e4   :  { %1546 = vpow2.f32 %v1238_v29 }
 0x6ec   :  { %v1545_v28 = vpop.eup %1544 }
 0x6ed   :  { %515 = vrot.lane.b32.xlu1 %v1545_v28, %s1594_s22  ;;  %v1061_v28 = vld [vmem:[%s1905_s4 + $0x8] sm:$0xff] }
 0x6ee   :  { %v1547_v30 = vpop.eup %1546 }
 0x6ef   :  { %v509_v31 = vadd.f32 1.0, %v1547_v30 }
 0x6f1   :  { %1548 = vrcp.f32 %v509_v31 }
 0x6fb   :  { %v1549_v33 = vpop.eup %1548 }
 0x6fc   :  { %v513_v36 = vmul.f32 %v1549_v33, %v421_v10 }
 0x75f   :  { %v516_v34 = vpop.permute.xlu1 %515 }
 0x760   :  { %v518_v35 = vmul.f32 %v1549_v33, %v516_v34  ;;  %v1062_v34 = vld [vmem:[%s1905_s4 + $0x10] sm:$0xff] }
 0x762   :  { %520 = vrot.lane.b32.xlu0 %v518_v35, %s1594_s22  ;;  %v1063_v35 = vld [vmem:[%s1905_s4 + $0x18] sm:$0xff] }
 0x7d4   :  { %v521_v40 = vpop.permute.xlu0 %520 }
 0x7d5   :  { %v523_v42 = vadd.f32 %v521_v40, %v513_v36  ;;  %v1511_v36 = vpack.c.bf16 %v1063_v35, %v1062_v34 }
 0x7d7   :  { %1550 = vtanh.f32 %v523_v42 }
 0x7e1   :  { %v1551_v43 = vpop.eup %1550 }
 0x7e2   :  { %526 = vrot.lane.b32.xlu1 %v1551_v43, %s1594_s22  ;;  %v1053_v43 = vld [vmem:[#allocation2 + $0x8] sm:$0xff] }
 0x854   :  { %v527_v44 = vpop.permute.xlu1 %526 }
 0x855   :  { %v529_v45 = vmul.f32 %v1549_v33, %v527_v44 }
 0x857   :  { %531 = vrot.lane.b32.xlu0 %v529_v45, %s1597_s1 }
 0x8c9   :  { %v532_v46 = vpop.permute.xlu0 %531 }
 0x8ca   :  { %534 = vst.msk [vmem:[#allocation2 + $0x10] sm:$0xff] %vm87_vm0, %v532_v46  ;;  %1385 = vmatmul.mubr.msk.f32.vlgmr.msra.gmra.mrb[8].mxu1 %vm87_vm0, %v532_v46 }
 0x8cb   :  { %1491 = vmatpush3.bf16.msra.mxu1 %v1687_v25  ;;  %1406 = vmatprep.mubr.msk.f32.mxu1 %vm1596_vm7, %v1595_v21 }
 0x8cc   :  { %1492 = vmatprep.subr.bf16.mxu1 %v1593_v13 }
 0x8cf   :  { %1494 = vmatpush3.bf16.msra.mxu1 %v1702_v32 }
 0x8d0   :  { %1501 = vmatprep.subr.bf16.mxu1 %v1593_v13 }
 0x8d1   :  { %v1054_v44 = vld [vmem:[#allocation2 + $0x10] sm:$0xff] }
 0x99d   :  { %v603_v47 = vpop.f32.mrb[8].mxu1 }
 0x99e   :  { %v607_v48 = vadd.f32 %v1336_v16, %v603_v47  ;;  %v1386_v49 = vpop.f32.mrb[9].mxu1 }
 0x9a0   :  { %1552 = vtanh.f32 %v607_v48  ;;  %v1240_v51 = vmul.f32 -1.442695, %v607_v48 }
 0x9a2   :  { %1554 = vpow2.f32 %v1240_v51  ;;  %v1844_v51 = vld [vmem:[%s1906_s5] ss:$0 sm:$0xff] }
 0x9aa   :  { %v1553_v50 = vpop.eup %1552 }
 0x9ab   :  { %617 = vrot.lane.b32.xlu1 %v1553_v50, %s1594_s22 }
 0x9ac   :  { %v1555_v52 = vpop.eup %1554 }
 0x9ad   :  { %v611_v53 = vadd.f32 1.0, %v1555_v52 }
 0x9af   :  { %1556 = vrcp.f32 %v611_v53 }
 0x9b9   :  { %v1557_v54 = vpop.eup %1556 }
 0x9ba   :  { %v615_v57 = vmul.f32 %v1557_v54, %v523_v42  ;;  %v1052_v42 = vld [vmem:[#allocation2] sm:$0xff] }
 0xa1d   :  { %v618_v55 = vpop.permute.xlu1 %617 }
 0xa1e   :  { %v620_v56 = vmul.f32 %v1557_v54, %v618_v55 }
 0xa20   :  { %622 = vrot.lane.b32.xlu0 %v620_v56, %s1594_s22 }
 0xa92   :  { %v623_v58 = vpop.permute.xlu0 %622 }
 0xa93   :  { %v625_v59 = vadd.f32 %v623_v58, %v615_v57 }
 0xa95   :  { %1558 = vtanh.f32 %v625_v59 }
 0xa9f   :  { %v1559_v60 = vpop.eup %1558 }
 0xaa0   :  { %628 = vrot.lane.b32.xlu1 %v1559_v60, %s1594_s22 }
 0xb12   :  { %v629_v61 = vpop.permute.xlu1 %628 }
 0xb13   :  { %v631_v62 = vmul.f32 %v1557_v54, %v629_v61 }
 0xb15   :  { %633 = vrot.lane.b32.xlu0 %v631_v62, %s1597_s1 }
 0xb87   :  { %v634_v63 = vpop.permute.xlu0 %633 }
 0xb88   :  { %636 = vst.msk [vmem:[#allocation2 + $0x18] sm:$0xff] %vm87_vm0, %v634_v63  ;;  %1396 = vmatmul.mubr.msk.f32.vlgmr.msra.gmra.mrb[6].mxu0 %vm87_vm0, %v634_v63 }
 0xb89   :  { %1497 = vmatpush3.bf16.msra.mxu0 %v1687_v25  ;;  %1417 = vmatprep.mubr.msk.f32.mxu0 %vm1596_vm7, %v1595_v21 }
 0xb8a   :  { %1498 = vmatprep.subr.bf16.mxu0 %v1593_v13 }
 0xb8d   :  { %1500 = vmatpush3.bf16.msra.mxu0 %v1702_v32 }
 0xb8f   :  { %v1055_v45 = vld [vmem:[#allocation2 + $0x18] sm:$0xff] }
 0xc5b   :  { %v705_v0 = vpop.f32.mrb[6].mxu0 }
 0xc5c   :  { %v709_v1 = vadd.f32 %v705_v0, %v1733_v38  ;;  %v1397_v2 = vpop.f32.mrb[7].mxu0 }
 0xc5e   :  { %1560 = vtanh.f32 %v709_v1  ;;  %v1242_v4 = vmul.f32 -1.442695, %v709_v1 }
 0xc60   :  { %1562 = vpow2.f32 %v1242_v4 }
 0xc68   :  { %v1561_v3 = vpop.eup %1560 }
 0xc69   :  { %719 = vrot.lane.b32.xlu1 %v1561_v3, %s1594_s22 }
 0xc6a   :  { %v1563_v5 = vpop.eup %1562 }
 0xc6b   :  { %v713_v6 = vadd.f32 1.0, %v1563_v5 }
 0xc6d   :  { %1564 = vrcp.f32 %v713_v6 }
 0xc77   :  { %v1565_v7 = vpop.eup %1564 }
 0xc78   :  { %v717_v10 = vmul.f32 %v1565_v7, %v625_v59 }
 0xcdb   :  { %v720_v8 = vpop.permute.xlu1 %719 }
 0xcdc   :  { %v722_v9 = vmul.f32 %v1565_v7, %v720_v8 }
 0xcde   :  { %724 = vrot.lane.b32.xlu0 %v722_v9, %s1594_s22 }
 0xd50   :  { %v725_v11 = vpop.permute.xlu0 %724 }
 0xd51   :  { %v727_v12 = vadd.f32 %v725_v11, %v717_v10 }
 0xd53   :  { %1566 = vtanh.f32 %v727_v12 }
 0xd5d   :  { %v1567_v38 = vpop.eup %1566 }
 0xd5e   :  { %730 = vrot.lane.b32.xlu1 %v1567_v38, %s1594_s22 }
 0xdd0   :  { %v731_v14 = vpop.permute.xlu1 %730 }
 0xdd1   :  { %v733_v15 = vmul.f32 %v1565_v7, %v731_v14 }
 0xdd3   :  { %735 = vrot.lane.b32.xlu0 %v733_v15, %s1597_s1 }
 0xe45   :  { %v736_v17 = vpop.permute.xlu0 %735 }
 0xe46   :  { %738 = vst.msk [vmem:[#allocation2 + $0x20] sm:$0xff] %vm87_vm0, %v736_v17  ;;  %1407 = vmatmul.mubr.msk.f32.vlgmr.msra.gmra.mrb[10].mxu1 %vm87_vm0, %v736_v17 }
 0xe47   :  { %1503 = vmatpush3.bf16.msra.mxu1 %v1687_v25  ;;  %1428 = vmatprep.mubr.msk.f32.mxu1 %vm1596_vm7, %v1595_v21 }
 0xe48   :  { %1504 = vmatprep.subr.bf16.mxu1 %v1593_v13 }
 0xe4b   :  { %1506 = vmatpush3.bf16.msra.mxu1 %v1702_v32 }
 0xe4d   :  { %v1056_v46 = vld [vmem:[#allocation2 + $0x20] sm:$0xff] }
 0xf19   :  { %v807_v18 = vpop.f32.mrb[10].mxu1 }
 0xf1a   :  { %v811_v19 = vadd.f32 %v1731_v37, %v807_v18  ;;  %v1408_v20 = vpop.f32.mrb[11].mxu1  ;;  %v1060_v37 = vld [vmem:[%s1905_s4] sm:$0xff] }
 0xf1b   :  { %v1507_v29 = vpack.c.bf16 %v1061_v28, %v1060_v37 }
 0xf1c   :  { %1568 = vtanh.f32 %v811_v19  ;;  %v1244_v16 = vmul.f32 -1.442695, %v811_v19 }
 0xf1d   :  { %1508 = vmatprep.subr.bf16.mxu0 %v1507_v29 }
 0xf1e   :  { %1570 = vpow2.f32 %v1244_v16 }
 0xf26   :  { %v1569_v22 = vpop.eup %1568 }
 0xf27   :  { %821 = vrot.lane.b32.xlu1 %v1569_v22, %s1594_s22 }
 0xf28   :  { %v1571_v23 = vpop.eup %1570 }
 0xf29   :  { %v815_v24 = vadd.f32 1.0, %v1571_v23 }
 0xf2b   :  { %1572 = vrcp.f32 %v815_v24 }
 0xf35   :  { %v1573_v25 = vpop.eup %1572 }
 0xf36   :  { %v819_v13 = vmul.f32 %v1573_v25, %v727_v12 }
 0xf99   :  { %v822_v26 = vpop.permute.xlu1 %821 }
 0xf9a   :  { %v824_v21 = vmul.f32 %v1573_v25, %v822_v26 }
 0xf9c   :  { %826 = vrot.lane.b32.xlu0 %v824_v21, %s1594_s22 }
0x100e   :  { %v827_v32 = vpop.permute.xlu0 %826 }
0x100f   :  { %v1815_v27 = vadd.f32 %v827_v32, %v819_v13 }
0x1011   :  { %1574 = vtanh.f32 %v1815_v27 }
0x101b   :  { %v1575_v30 = vpop.eup %1574 }
0x101c   :  { %832 = vrot.lane.b32.xlu1 %v1575_v30, %s1594_s22 }
0x108e   :  { %v833_v31 = vpop.permute.xlu1 %832 }
0x108f   :  { %v835_v33 = vmul.f32 %v1573_v25, %v833_v31 }
0x1091   :  { %837 = vrot.lane.b32.xlu0 %v835_v33, %s1597_s1 }
0x1103   :  { %v838_v40 = vpop.permute.xlu0 %837 }
0x1104   :  { %840 = vst.msk [vmem:[#allocation2 + $0x28] sm:$0xff] %vm87_vm0, %v838_v40  ;;  %1418 = vmatmul.mubr.msk.f32.vlgmr.msra.gmra.mrb[8].mxu0 %vm87_vm0, %v838_v40 }
0x1105   :  { %1510 = vmatpush3.bf16.msra.mxu0 %v1507_v29  ;;  %1439 = vmatprep.mubr.msk.f32.mxu0 %vm87_vm0, %v1052_v42 }
0x1106   :  { %1512 = vmatprep.subr.bf16.mxu0 %v1511_v36 }
0x1109   :  { %1514 = vmatpush3.bf16.msra.mxu0 %v1511_v36 }
0x110b   :  { %v1057_v47 = vld [vmem:[#allocation2 + $0x28] sm:$0xff] }
0x110c   :  { %1440 = vmatmul.mubr.msk.f32.vlgmr.msra.gmra.mrb[10].mxu0 %vm87_vm0, %v1053_v43 }
0x110d   :  { %1442 = vmatprep.mubr.msk.f32.mxu0 %vm87_vm0, %v1054_v44 }
0x1110   :  { %1443 = vmatmul.mubr.msk.f32.gmra.mrb[12].mxu0 %vm87_vm0, %v1055_v45 }
0x1111   :  { %1445 = vmatprep.mubr.msk.f32.mxu0 %vm87_vm0, %v1056_v46 }
0x1114   :  { %1446 = vmatmul.mubr.msk.f32.gmra.mrb[14].mxu0 %vm87_vm0, %v1057_v47 }
0x11d7   :  { %v909_v48 = vpop.f32.mrb[8].mxu0 }
0x11d8   :  { %v913_v49 = vadd.f32 %v909_v48, %v1737_v41  ;;  %v1419_v50 = vpop.f32.mrb[9].mxu0 }
0x11da   :  { %1576 = vtanh.f32 %v913_v49  ;;  %v1246_v0 = vmul.f32 -1.442695, %v913_v49 }
0x11dc   :  { %1578 = vpow2.f32 %v1246_v0 }
0x11df   :  { %v1441_v52 = vpop.f32.mrb[10].mxu0 }
0x11e0   :  { %v1167_v53 = vadd.f32 %v1441_v52, %v1844_v51  ;;  %v1161_v54 = vpop.f32.mrb[11].mxu0 }
0x11e1   :  { %v1162_v55 = vadd.f32 %v1844_v51, %v1161_v54 }
0x11e2   :  { %1201 = vst [vmem:[%s1907_s6 + $0x8] sm:$0xff] %v1167_v53 }
0x11e3   :  { %1200 = vst [vmem:[%s1907_s6] sm:$0xff] %v1162_v55  ;;  %v1444_v41 = vpop.f32.mrb[12].mxu0 }
0x11e4   :  { %v1577_v56 = vpop.eup %1576  ;;  %v1177_v57 = vadd.f32 %v1444_v41, %v1844_v51  ;;  %v1171_v58 = vpop.f32.mrb[13].mxu0 }
0x11e5   :  { %v1172_v59 = vadd.f32 %v1844_v51, %v1171_v58  ;;  %923 = vrot.lane.b32.xlu1 %v1577_v56, %s1594_s22 }
0x11e6   :  { %1203 = vst [vmem:[%s1907_s6 + $0x18] sm:$0xff] %v1177_v57  ;;  %v1579_v1 = vpop.eup %1578 }
0x11e7   :  { %1202 = vst [vmem:[%s1907_s6 + $0x10] sm:$0xff] %v1172_v59  ;;  %v1447_v60 = vpop.f32.mrb[14].mxu0  ;;  %v917_v2 = vadd.f32 1.0, %v1579_v1 }
0x11e8   :  { %v1187_v61 = vadd.f32 %v1447_v60, %v1844_v51  ;;  %v1181_v62 = vpop.f32.mrb[15].mxu0 }
0x11e9   :  { %v1182_v63 = vadd.f32 %v1844_v51, %v1181_v62  ;;  %1580 = vrcp.f32 %v917_v2 }
0x11ea   :  { %1205 = vst [vmem:[%s1907_s6 + $0x28] sm:$0xff] %v1187_v61 }
0x11eb   :  { %1204 = vst [vmem:[%s1907_s6 + $0x20] sm:$0xff] %v1182_v63 }
0x11f3   :  { %v1581_v3 = vpop.eup %1580 }
0x11f4   :  { %v921_v6 = vmul.f32 %v1581_v3, %v1815_v27 }
0x1257   :  { %v924_v4 = vpop.permute.xlu1 %923 }
0x1258   :  { %v926_v5 = vmul.f32 %v1581_v3, %v924_v4 }
0x125a   :  { %928 = vrot.lane.b32.xlu0 %v926_v5, %s1594_s22 }
0x12cc   :  { %v929_v7 = vpop.permute.xlu0 %928 }
0x12cd   :  { %v931_v8 = vadd.f32 %v929_v7, %v921_v6 }
0x12cf   :  { %1582 = vtanh.f32 %v931_v8 }
0x12d9   :  { %v1583_v9 = vpop.eup %1582 }
0x12da   :  { %934 = vrot.lane.b32.xlu1 %v1583_v9, %s1594_s22 }
0x134c   :  { %v935_v10 = vpop.permute.xlu1 %934 }
0x134d   :  { %v937_v11 = vmul.f32 %v1581_v3, %v935_v10 }
0x134f   :  { %939 = vrot.lane.b32.xlu0 %v937_v11, %s1597_s1 }
0x13c1   :  { %v940_v12 = vpop.permute.xlu0 %939 }
0x13c2   :  { %942 = vst.msk [vmem:[#allocation2 + $0x30] sm:$0xff] %vm87_vm0, %v940_v12  ;;  %1429 = vmatmul.mubr.msk.f32.vlgmr.msra.gmra.mrb[12].mxu1 %vm87_vm0, %v940_v12 }
0x13c9   :  { %v1058_v38 = vld [vmem:[#allocation2 + $0x30] sm:$0xff] }
0x13ca   :  { %1448 = vmatprep.mubr.msk.f32.mxu0 %vm87_vm0, %v1058_v38 }
0x1495   :  { %v1011_v14 = vpop.f32.mrb[12].mxu1 }
0x1496   :  { %v1015_v15 = vadd.f32 %v1735_v39, %v1011_v14  ;;  %v1430_v17 = vpop.f32.mrb[13].mxu1 }
0x1498   :  { %1584 = vtanh.f32 %v1015_v15  ;;  %v1248_v19 = vmul.f32 -1.442695, %v1015_v15 }
0x149a   :  { %1586 = vpow2.f32 %v1248_v19 }
0x14a2   :  { %v1585_v18 = vpop.eup %1584 }
0x14a3   :  { %1025 = vrot.lane.b32.xlu1 %v1585_v18, %s1594_s22 }
0x14a4   :  { %v1587_v20 = vpop.eup %1586 }
0x14a5   :  { %v1019_v22 = vadd.f32 1.0, %v1587_v20 }
0x14a7   :  { %1588 = vrcp.f32 %v1019_v22 }
0x14b1   :  { %v1589_v16 = vpop.eup %1588 }
0x14b2   :  { %v1023_v25 = vmul.f32 %v1589_v16, %v931_v8 }
0x1515   :  { %v1026_v23 = vpop.permute.xlu1 %1025 }
0x1516   :  { %v1028_v24 = vmul.f32 %v1589_v16, %v1026_v23 }
0x1518   :  { %1030 = vrot.lane.b32.xlu0 %v1028_v24, %s1594_s22 }
0x158a   :  { %v1031_v26 = vpop.permute.xlu0 %1030 }
0x158b   :  { %v1033_v21 = vadd.f32 %v1031_v26, %v1023_v25 }
0x158d   :  { %1590 = vtanh.f32 %v1033_v21 }
0x1597   :  { %v1591_v39 = vpop.eup %1590 }
0x1598   :  { %1036 = vrot.lane.b32.xlu1 %v1591_v39, %s1594_s22 }
0x159c   :  { %1047 = vrot.lane.b32.xlu1 %v1033_v21, %s1598_s8 }
0x160a   :  { %v1037_v13 = vpop.permute.xlu1 %1036 }
0x160b   :  { %v1039_v32 = vmul.f32 %v1589_v16, %v1037_v13 }
0x160d   :  { %1041 = vrot.lane.b32.xlu0 %v1039_v32, %s1597_s1 }
0x160e   :  { %v1048_v27 = vpop.permute.xlu1 %1047 }
0x160f   :  { %1249 = vst.msk [vmem:[%s1908_s7 + $0x8] sm:$0xff] %vm87_vm0, %v1048_v27 }
0x167f   :  { %v1042_v37 = vpop.permute.xlu0 %1041 }
0x1680   :  { %1044 = vst.msk [vmem:[#allocation2 + $0x38] sm:$0xff] %vm87_vm0, %v1042_v37  ;;  %1045 = vst.msk [vmem:[%s1908_s7] sm:$0xff] %vm87_vm0, %v1042_v37 }
0x1687   :  { %v1059_v28 = vld [vmem:[#allocation2 + $0x38] sm:$0xff] }
0x1688   :  { %1449 = vmatmul.mubr.msk.f32.gmra.mrb[16].mxu0 %vm87_vm0, %v1059_v28 }
0x175b   :  { %v1450_v29 = vpop.f32.mrb[16].mxu0 }
0x175c   :  { %v1197_v30 = vadd.f32 %v1450_v29, %v1844_v51  ;;  %v1191_v31 = vpop.f32.mrb[17].mxu0 }
0x175d   :  { %v1192_v33 = vadd.f32 %v1844_v51, %v1191_v31 }
0x175e   :  { %1207 = vst [vmem:[%s1907_s6 + $0x38] sm:$0xff] %v1197_v30 }
0x175f   :  { %1206 = vst [vmem:[%s1907_s6 + $0x30] sm:$0xff] %v1192_v33 }

</bundles_post_ra>
